<compile_context>
chip_gen: v5e
topology: v5e:2x2
jax: 0.10.0
libtpu: 0.0.40
codegen_flags: <defaults>
</compile_context>

<pallas_src>
import functools

import jax
import jax.numpy as jnp
from jax.experimental import pallas as pl
from jax.experimental.pallas import tpu as pltpu

EPS = 1e-5          # nn.BatchNorm2d default eps
NEG_SLOPE = 0.01    # nn.LeakyReLU default negative_slope


def _round_up(x, m):
    return ((x + m - 1) // m) * m


# ---------------------------------------------------------------------------
# Pass 1: fused complex conv (single (tm,2K)x(2K,2Cout) matmul) + per-channel
#         sum / sum-of-squares accumulated across the M = N*Ho*Wo axis.
# ---------------------------------------------------------------------------
def conv_stats_kernel(x2_ref, w2_ref, c_ref, sum_ref, sq_ref):
    i = pl.program_id(0)

    @pl.when(i == 0)
    def _init():
        sum_ref[...] = jnp.zeros_like(sum_ref)
        sq_ref[...] = jnp.zeros_like(sq_ref)

    # [cr | ci] in one MXU matmul; conv biases omitted (they cancel under BN).
    c = jnp.dot(x2_ref[...], w2_ref[...], preferred_element_type=jnp.float32)
    c_ref[...] = c

    # Running per-channel statistics (zero-padded rows of X2 contribute exactly 0).
    sum_ref[...] += jnp.sum(c, axis=0, keepdims=True)
    sq_ref[...] += jnp.sum(c * c, axis=0, keepdims=True)


# ---------------------------------------------------------------------------
# Pass 2: BatchNorm normalize (batch stats, biased variance) + LeakyReLU on
#         lane-dense (tm, 128) tiles.
# ---------------------------------------------------------------------------
def bn_act_kernel(c_ref, sum_ref, sq_ref, gamma_ref, beta_ref, o_ref, *, inv_m):
    mean = sum_ref[...] * inv_m
    var = jnp.maximum(sq_ref[...] * inv_m - mean * mean, 0.0)
    scale = gamma_ref[...] * jax.lax.rsqrt(var + EPS)
    shift = beta_ref[...] - mean * scale
    y = c_ref[...] * scale + shift
    o_ref[...] = jnp.where(y >= 0, y, NEG_SLOPE * y)


def _patches(x_part, kh, kw, sh, sw, ph, pw):
    """(N, C, H, W) -> (N*Ho*Wo, C*kh*kw) patch matrix, (c, kh, kw) ordering
    to match PyTorch's (Cout, Cin, kh, kw) weight flattening."""
    # TODO(synk): extract patches in-kernel with strided pl.ds reads from an (N,C,H,W)
    # block to avoid the kh*kw/(sh*sw) HBM read amplification of materialised patches.
    N = x_part.shape[0]
    p = jax.lax.conv_general_dilated_patches(
        x_part, filter_shape=(kh, kw), window_strides=(sh, sw),
        padding=[(ph, ph), (pw, pw)],
        dimension_numbers=('NCHW', 'OIHW', 'NCHW'))          # (N, C*kh*kw, Ho, Wo)
    _, K, Ho, Wo = p.shape
    p = jnp.transpose(p, (0, 2, 3, 1)).reshape(N * Ho * Wo, K)
    return p, Ho, Wo


def encoder_forward(x, params, filter_size=(7, 5), stride_size=(2, 2),
                    padding=(0, 0), tile_m=512):
    """x: (N, Cin, H, W, 2) float32 -> (N, Cout, Ho, Wo, 2) float32."""
    kh, kw = filter_size
    sh, sw = stride_size
    ph, pw = padding
    N = x.shape[0]
    Cout = params["wr"].shape[0]

    xr_col, Ho, Wo = _patches(x[..., 0], kh, kw, sh, sw, ph, pw)
    xi_col, _, _ = _patches(x[..., 1], kh, kw, sh, sw, ph, pw)
    M, K = xr_col.shape
    K2 = 2 * K
    C2 = 2 * Cout

    # ---- TPU-friendly padding: lane dims -> multiples of 128, rows -> multiples of 8 ----
    K2p = _round_up(K2, 128)
    Cp = _round_up(C2, 128)
    tm = min(tile_m, _round_up(M, 8))
    # keep double-buffered tiles well inside VMEM (v7x: 64 MiB physical / 32 MiB scoped)
    while tm > 8 and 4 * (2 * tm * K2p + 2 * K2p * Cp + 4 * tm * Cp) > 24 * 1024 * 1024:
        tm = _round_up(tm // 2, 8)
    Mp = _round_up(M, tm)
    grid = (Mp // tm,)

    # Packed input  X2 = [Xr | Xi]
    x2 = jnp.concatenate([xr_col, xi_col], axis=1)                 # (M, 2K)
    x2 = jnp.pad(x2, ((0, Mp - M), (0, K2p - K2)))

    # Packed weight W2 = [[Wr, Wi], [-Wi, Wr]]
    wr = params["wr"].reshape(Cout, K).T                           # (K, Cout)
    wi = params["wi"].reshape(Cout, K).T
    w2 = jnp.concatenate(
        [jnp.concatenate([wr, wi], axis=1),
         jnp.concatenate([-wi, wr], axis=1)], axis=0)              # (2K, 2Cout)
    w2 = jnp.pad(w2, ((0, K2p - K2), (0, Cp - C2)))

    row = lambda a, b: jnp.pad(jnp.concatenate([a, b])[None, :],
                               ((0, 0), (0, Cp - C2)))
    gamma2 = row(params["gamma_r"], params["gamma_i"])             # (1, Cp)
    beta2 = row(params["beta_r"], params["beta_i"])                # (1, Cp)

    f32 = jnp.float32

    # ---- pass 1: conv matmul + per-channel stats accumulation ----
    conv_out, sum_c, sq_c = pl.pallas_call(
        conv_stats_kernel,
        out_shape=(jax.ShapeDtypeStruct((Mp, Cp), f32),
                   jax.ShapeDtypeStruct((1, Cp), f32),
                   jax.ShapeDtypeStruct((1, Cp), f32)),
        grid_spec=pltpu.PrefetchScalarGridSpec(
            num_scalar_prefetch=0,
            grid=grid,
            in_specs=[pl.BlockSpec((tm, K2p), lambda i: (i, 0)),
                      pl.BlockSpec((K2p, Cp), lambda i: (0, 0))],
            out_specs=(pl.BlockSpec((tm, Cp), lambda i: (i, 0)),
                       pl.BlockSpec((1, Cp), lambda i: (0, 0)),
                       pl.BlockSpec((1, Cp), lambda i: (0, 0)))),
        compiler_params=pltpu.CompilerParams(
            dimension_semantics=("arbitrary",),      # stats accumulate across M tiles
            vmem_limit_bytes=32 * 1024 * 1024),
        cost_estimate=pl.CostEstimate(
            flops=2 * Mp * K2p * Cp + 4 * Mp * Cp,
            transcendentals=0,
            bytes_accessed=4 * (Mp * K2p + K2p * Cp + Mp * Cp + 2 * Cp)),
    )(x2, w2)

    # ---- pass 2: normalize + LeakyReLU (elementwise, parallel over M tiles) ----
    out_pad = pl.pallas_call(
        functools.partial(bn_act_kernel, inv_m=1.0 / float(M)),
        out_shape=jax.ShapeDtypeStruct((Mp, Cp), f32),
        grid_spec=pltpu.PrefetchScalarGridSpec(
            num_scalar_prefetch=0,
            grid=grid,
            in_specs=[pl.BlockSpec((tm, Cp), lambda i: (i, 0)),
                      pl.BlockSpec((1, Cp), lambda i: (0, 0)),
                      pl.BlockSpec((1, Cp), lambda i: (0, 0)),
                      pl.BlockSpec((1, Cp), lambda i: (0, 0)),
                      pl.BlockSpec((1, Cp), lambda i: (0, 0))],
            out_specs=pl.BlockSpec((tm, Cp), lambda i: (i, 0))),
        compiler_params=pltpu.CompilerParams(
            dimension_semantics=("parallel",),       # shardable across TCs on v7x
            vmem_limit_bytes=32 * 1024 * 1024),
        cost_estimate=pl.CostEstimate(
            flops=6 * Mp * Cp,
            transcendentals=Cp,
            bytes_accessed=4 * (2 * Mp * Cp + 4 * Cp)),
    )(conv_out, sum_c, sq_c, gamma2, beta2)

    # ---- back to PyTorch layout (N, Cout, Ho, Wo, 2): slice pads, split [real|imag] ----
    y = out_pad[:M, :C2].reshape(N, Ho, Wo, 2, Cout)
    return jnp.transpose(y, (0, 4, 1, 2, 3))


# ---------------------------------------------------------------------------
# Pure-JAX reference of the same Encoder forward (for a sanity check only).
# ---------------------------------------------------------------------------
def encoder_reference(x, params, filter_size, stride_size, padding):
    kh, kw = filter_size
    sh, sw = stride_size
    ph, pw = padding
    xr, xi = x[..., 0], x[..., 1]

    def conv(inp, w, b):
        y = jax.lax.conv_general_dilated(
            inp, w, window_strides=(sh, sw), padding=[(ph, ph), (pw, pw)],
            dimension_numbers=('NCHW', 'OIHW', 'NCHW'),
            precision=jax.lax.Precision.HIGHEST)
        return y + b[None, :, None, None]

    cr = conv(xr, params["wr"], params["br"]) - conv(xi, params["wi"], params["bi"])
    ci = conv(xr, params["wi"], params["bi"]) + conv(xi, params["wr"], params["br"])

    def bn(c, g, b):
        mean = jnp.mean(c, axis=(0, 2, 3), keepdims=True)
        var = jnp.mean((c - mean) ** 2, axis=(0, 2, 3), keepdims=True)
        return ((c - mean) * jax.lax.rsqrt(var + EPS) * g[None, :, None, None]
                + b[None, :, None, None])

    act = lambda v: jnp.where(v >= 0, v, NEG_SLOPE * v)
    return jnp.stack([act(bn(cr, params["gamma_r"], params["beta_r"])),
                      act(bn(ci, params["gamma_i"], params["beta_i"]))], axis=-1)


if __name__ == "__main__":
    # Encoder defaults: in_channels=1, out_channels=45, kernel=(7,5), stride=(2,2), padding=(0,0)
    N, Cin, H, W = 2, 1, 16, 16
    Cout, kh, kw = 45, 7, 5

    keys = jax.random.split(jax.random.PRNGKey(0), 9)
    x = jax.random.normal(keys[0], (N, Cin, H, W, 2), dtype=jnp.float32)

    params = dict(
        wr=0.1 * jax.random.normal(keys[1], (Cout, Cin, kh, kw), jnp.float32),
        wi=0.1 * jax.random.normal(keys[2], (Cout, Cin, kh, kw), jnp.float32),
        # conv biases kept for API completeness; they cancel exactly under BatchNorm
        br=0.1 * jax.random.normal(keys[3], (Cout,), jnp.float32),
        bi=0.1 * jax.random.normal(keys[4], (Cout,), jnp.float32),
        gamma_r=1.0 + 0.1 * jax.random.normal(keys[5], (Cout,), jnp.float32),
        beta_r=0.1 * jax.random.normal(keys[6], (Cout,), jnp.float32),
        gamma_i=1.0 + 0.1 * jax.random.normal(keys[7], (Cout,), jnp.float32),
        beta_i=0.1 * jax.random.normal(keys[8], (Cout,), jnp.float32),
    )

    fwd = jax.jit(functools.partial(encoder_forward,
                                    filter_size=(kh, kw),
                                    stride_size=(2, 2),
                                    padding=(0, 0)))
    out = jax.block_until_ready(fwd(x, params))

    Ho = (H - kh) // 2 + 1   # 5
    Wo = (W - kw) // 2 + 1   # 6
    assert out.shape == (N, Cout, Ho, Wo, 2), out.shape
    assert out.dtype == jnp.float32
    assert bool(jnp.all(jnp.isfinite(out)))

    ref = encoder_reference(x, params, (kh, kw), (2, 2), (0, 0))
    assert bool(jnp.allclose(out, ref, atol=2e-3, rtol=2e-3)), \
        float(jnp.max(jnp.abs(out - ref)))

    print("KERNEL_OK")
</pallas_src>

<mosaic_0001>
module attributes {stable_mosaic.version = 11 : i64} {
  func.func @conv_stats_kernel(%arg0: i32, %arg1: memref<64x128xf32, #tpu.memory_space<vmem>>, %arg2: memref<128x128xf32, #tpu.memory_space<vmem>>, %arg3: memref<64x128xf32, #tpu.memory_space<vmem>>, %arg4: memref<1x128xf32, #tpu.memory_space<vmem>>, %arg5: memref<1x128xf32, #tpu.memory_space<vmem>>) attributes {dimension_semantics = [#tpu.dimension_semantics<arbitrary>], iteration_bounds = array<i64: 1>, scalar_prefetch = 0 : i64, scratch_operands = 0 : i64, tpu.core_type = #tpu.core_type<tc>, window_params = [{transform_indices = @transform_0, window_bounds = array<i64: 64, 128>}, {pipeline_mode = #tpu.pipeline_mode<synchronous>, transform_indices = @transform_1, window_bounds = array<i64: 128, 128>}, {transform_indices = @transform_2, window_bounds = array<i64: 64, 128>}, {pipeline_mode = #tpu.pipeline_mode<synchronous>, transform_indices = @transform_3, window_bounds = array<i64: 1, 128>}, {pipeline_mode = #tpu.pipeline_mode<synchronous>, transform_indices = @transform_4, window_bounds = array<i64: 1, 128>}]} {
    %c0_i32 = arith.constant 0 : i32
    %0 = arith.cmpi eq, %arg0, %c0_i32 : i32
    %1 = arith.extui %0 : i1 to i32
    %c0_i32_0 = arith.constant 0 : i32
    %2 = arith.cmpi ne, %1, %c0_i32_0 : i32
    scf.if %2 {
      %cst_16 = arith.constant 0.000000e+00 : f32
      %18 = vector.broadcast %cst_16 : f32 to vector<1x128xf32>
      %c0_17 = arith.constant 0 : index
      %c0_18 = arith.constant 0 : index
      %19 = vector.load %arg4[%c0_17, %c0_18] : memref<1x128xf32, #tpu.memory_space<vmem>>, vector<1x128xf32>
      tpu.vector_store %arg4[%c0_17, %c0_18], %18 {strides = array<i32>} : memref<1x128xf32, #tpu.memory_space<vmem>>, vector<1x128xf32>,
      %cst_19 = arith.constant 0.000000e+00 : f32
      %20 = vector.broadcast %cst_19 : f32 to vector<1x128xf32>
      %c0_20 = arith.constant 0 : index
      %c0_21 = arith.constant 0 : index
      %21 = vector.load %arg5[%c0_20, %c0_21] : memref<1x128xf32, #tpu.memory_space<vmem>>, vector<1x128xf32>
      tpu.vector_store %arg5[%c0_20, %c0_21], %20 {strides = array<i32>} : memref<1x128xf32, #tpu.memory_space<vmem>>, vector<1x128xf32>,
    } else {
    }
    %c0 = arith.constant 0 : index
    %c0_1 = arith.constant 0 : index
    %3 = vector.load %arg1[%c0, %c0_1] : memref<64x128xf32, #tpu.memory_space<vmem>>, vector<64x128xf32>
    %c0_2 = arith.constant 0 : index
    %c0_3 = arith.constant 0 : index
    %4 = vector.load %arg2[%c0_2, %c0_3] : memref<128x128xf32, #tpu.memory_space<vmem>>, vector<128x128xf32>
    %cst = arith.constant dense<0.000000e+00> : vector<64x128xf32>
    %5 = tpu.matmul %3, %4, %cst {dimension_numbers = #tpu.dot_dimension_numbers<[1], [0], [0], [1], [0, 0, 1, 1], [], []>} : vector<64x128xf32>, vector<128x128xf32>, vector<64x128xf32> -> vector<64x128xf32>
    %c0_4 = arith.constant 0 : index
    %c0_5 = arith.constant 0 : index
    %6 = vector.load %arg3[%c0_4, %c0_5] : memref<64x128xf32, #tpu.memory_space<vmem>>, vector<64x128xf32>
    tpu.vector_store %arg3[%c0_4, %c0_5], %5 {strides = array<i32>} : memref<64x128xf32, #tpu.memory_space<vmem>>, vector<64x128xf32>,
    %c0_6 = arith.constant 0 : index
    %c0_7 = arith.constant 0 : index
    %7 = vector.load %arg4[%c0_6, %c0_7] : memref<1x128xf32, #tpu.memory_space<vmem>>, vector<1x128xf32>
    %cst_8 = arith.constant dense<0.000000e+00> : vector<128xf32>
    %8 = vector.multi_reduction <add>, %5, %cst_8 [0] : vector<64x128xf32> to vector<128xf32>
    %9 = vector.shape_cast %8 : vector<128xf32> to vector<1x128xf32>
    %10 = arith.addf %7, %9 : vector<1x128xf32>
    %c0_9 = arith.constant 0 : index
    %c0_10 = arith.constant 0 : index
    %11 = vector.load %arg4[%c0_9, %c0_10] : memref<1x128xf32, #tpu.memory_space<vmem>>, vector<1x128xf32>
    tpu.vector_store %arg4[%c0_9, %c0_10], %10 {strides = array<i32>} : memref<1x128xf32, #tpu.memory_space<vmem>>, vector<1x128xf32>,
    %c0_11 = arith.constant 0 : index
    %c0_12 = arith.constant 0 : index
    %12 = vector.load %arg5[%c0_11, %c0_12] : memref<1x128xf32, #tpu.memory_space<vmem>>, vector<1x128xf32>
    %13 = arith.mulf %5, %5 : vector<64x128xf32>
    %cst_13 = arith.constant dense<0.000000e+00> : vector<128xf32>
    %14 = vector.multi_reduction <add>, %13, %cst_13 [0] : vector<64x128xf32> to vector<128xf32>
    %15 = vector.shape_cast %14 : vector<128xf32> to vector<1x128xf32>
    %16 = arith.addf %12, %15 : vector<1x128xf32>
    %c0_14 = arith.constant 0 : index
    %c0_15 = arith.constant 0 : index
    %17 = vector.load %arg5[%c0_14, %c0_15] : memref<1x128xf32, #tpu.memory_space<vmem>>, vector<1x128xf32>
    tpu.vector_store %arg5[%c0_14, %c0_15], %16 {strides = array<i32>} : memref<1x128xf32, #tpu.memory_space<vmem>>, vector<1x128xf32>,
    return
  }
  func.func @transform_0(%arg0: i32) -> (i32, i32) {
    %c0_i32 = arith.constant 0 : i32
    %c0_i32_0 = arith.constant 0 : i32
    return %arg0, %c0_i32 : i32, i32
  }
  func.func @transform_1(%arg0: i32) -> (i32, i32) {
    %c0_i32 = arith.constant 0 : i32
    %c0_i32_0 = arith.constant 0 : i32
    %c0_i32_1 = arith.constant 0 : i32
    return %c0_i32, %c0_i32_0 : i32, i32
  }
  func.func @transform_2(%arg0: i32) -> (i32, i32) {
    %c0_i32 = arith.constant 0 : i32
    %c0_i32_0 = arith.constant 0 : i32
    return %arg0, %c0_i32 : i32, i32
  }
  func.func @transform_3(%arg0: i32) -> (i32, i32) {
    %c0_i32 = arith.constant 0 : i32
    %c0_i32_0 = arith.constant 0 : i32
    %c0_i32_1 = arith.constant 0 : i32
    return %c0_i32, %c0_i32_0 : i32, i32
  }
  func.func @transform_4(%arg0: i32) -> (i32, i32) {
    %c0_i32 = arith.constant 0 : i32
    %c0_i32_0 = arith.constant 0 : i32
    %c0_i32_1 = arith.constant 0 : i32
    return %c0_i32, %c0_i32_0 : i32, i32
  }
}

module attributes {stable_mosaic.version = 11 : i64} {
  func.func @bn_act_kernel(%arg0: i32, %arg1: memref<64x128xf32, #tpu.memory_space<vmem>>, %arg2: memref<1x128xf32, #tpu.memory_space<vmem>>, %arg3: memref<1x128xf32, #tpu.memory_space<vmem>>, %arg4: memref<1x128xf32, #tpu.memory_space<vmem>>, %arg5: memref<1x128xf32, #tpu.memory_space<vmem>>, %arg6: memref<64x128xf32, #tpu.memory_space<vmem>>) attributes {dimension_semantics = [#tpu.dimension_semantics<parallel>], iteration_bounds = array<i64: 1>, scalar_prefetch = 0 : i64, scratch_operands = 0 : i64, tpu.core_type = #tpu.core_type<tc>, window_params = [{transform_indices = @transform_0, window_bounds = array<i64: 64, 128>}, {pipeline_mode = #tpu.pipeline_mode<synchronous>, transform_indices = @transform_1, window_bounds = array<i64: 1, 128>}, {pipeline_mode = #tpu.pipeline_mode<synchronous>, transform_indices = @transform_2, window_bounds = array<i64: 1, 128>}, {pipeline_mode = #tpu.pipeline_mode<synchronous>, transform_indices = @transform_3, window_bounds = array<i64: 1, 128>}, {pipeline_mode = #tpu.pipeline_mode<synchronous>, transform_indices = @transform_4, window_bounds = array<i64: 1, 128>}, {transform_indices = @transform_5, window_bounds = array<i64: 64, 128>}]} {
    %c0 = arith.constant 0 : index
    %c0_0 = arith.constant 0 : index
    %0 = vector.load %arg2[%c0, %c0_0] : memref<1x128xf32, #tpu.memory_space<vmem>>, vector<1x128xf32>
    %cst = arith.constant 0.0166666675 : f32
    %1 = vector.broadcast %cst : f32 to vector<1x128xf32>
    %2 = arith.mulf %0, %1 : vector<1x128xf32>
    %c0_1 = arith.constant 0 : index
    %c0_2 = arith.constant 0 : index
    %3 = vector.load %arg3[%c0_1, %c0_2] : memref<1x128xf32, #tpu.memory_space<vmem>>, vector<1x128xf32>
    %cst_3 = arith.constant 0.0166666675 : f32
    %4 = vector.broadcast %cst_3 : f32 to vector<1x128xf32>
    %5 = arith.mulf %3, %4 : vector<1x128xf32>
    %6 = arith.mulf %2, %2 : vector<1x128xf32>
    %7 = arith.subf %5, %6 : vector<1x128xf32>
    %cst_4 = arith.constant 0.000000e+00 : f32
    %8 = vector.broadcast %cst_4 : f32 to vector<1x128xf32>
    %9 = arith.maximumf %7, %8 : vector<1x128xf32>
    %c0_5 = arith.constant 0 : index
    %c0_6 = arith.constant 0 : index
    %10 = vector.load %arg4[%c0_5, %c0_6] : memref<1x128xf32, #tpu.memory_space<vmem>>, vector<1x128xf32>
    %cst_7 = arith.constant 9.99999974E-6 : f32
    %11 = vector.broadcast %cst_7 : f32 to vector<1x128xf32>
    %12 = arith.addf %9, %11 : vector<1x128xf32>
    %13 = math.rsqrt %12 : vector<1x128xf32>
    %14 = arith.mulf %10, %13 : vector<1x128xf32>
    %c0_8 = arith.constant 0 : index
    %c0_9 = arith.constant 0 : index
    %15 = vector.load %arg5[%c0_8, %c0_9] : memref<1x128xf32, #tpu.memory_space<vmem>>, vector<1x128xf32>
    %16 = arith.mulf %2, %14 : vector<1x128xf32>
    %17 = arith.subf %15, %16 : vector<1x128xf32>
    %c0_10 = arith.constant 0 : index
    %c0_11 = arith.constant 0 : index
    %18 = vector.load %arg1[%c0_10, %c0_11] : memref<64x128xf32, #tpu.memory_space<vmem>>, vector<64x128xf32>
    %19 = vector.broadcast %14 : vector<1x128xf32> to vector<64x128xf32>
    %20 = arith.mulf %18, %19 : vector<64x128xf32>
    %21 = vector.broadcast %17 : vector<1x128xf32> to vector<64x128xf32>
    %22 = arith.addf %20, %21 : vector<64x128xf32>
    %cst_12 = arith.constant 0.000000e+00 : f32
    %23 = vector.broadcast %cst_12 : f32 to vector<64x128xf32>
    %24 = arith.cmpf oge, %22, %23 : vector<64x128xf32>
    %cst_13 = arith.constant 0.00999999977 : f32
    %25 = vector.broadcast %cst_13 : f32 to vector<64x128xf32>
    %26 = arith.mulf %25, %22 : vector<64x128xf32>
    %27 = arith.select %24, %22, %26 : vector<64x128xi1>, vector<64x128xf32>
    %c0_14 = arith.constant 0 : index
    %c0_15 = arith.constant 0 : index
    %28 = vector.load %arg6[%c0_14, %c0_15] : memref<64x128xf32, #tpu.memory_space<vmem>>, vector<64x128xf32>
    tpu.vector_store %arg6[%c0_14, %c0_15], %27 {strides = array<i32>} : memref<64x128xf32, #tpu.memory_space<vmem>>, vector<64x128xf32>,
    return
  }
  func.func @transform_0(%arg0: i32) -> (i32, i32) {
    %c0_i32 = arith.constant 0 : i32
    %c0_i32_0 = arith.constant 0 : i32
    return %arg0, %c0_i32 : i32, i32
  }
  func.func @transform_1(%arg0: i32) -> (i32, i32) {
    %c0_i32 = arith.constant 0 : i32
    %c0_i32_0 = arith.constant 0 : i32
    %c0_i32_1 = arith.constant 0 : i32
    return %c0_i32, %c0_i32_0 : i32, i32
  }
  func.func @transform_2(%arg0: i32) -> (i32, i32) {
    %c0_i32 = arith.constant 0 : i32
    %c0_i32_0 = arith.constant 0 : i32
    %c0_i32_1 = arith.constant 0 : i32
    return %c0_i32, %c0_i32_0 : i32, i32
  }
  func.func @transform_3(%arg0: i32) -> (i32, i32) {
    %c0_i32 = arith.constant 0 : i32
    %c0_i32_0 = arith.constant 0 : i32
    %c0_i32_1 = arith.constant 0 : i32
    return %c0_i32, %c0_i32_0 : i32, i32
  }
  func.func @transform_4(%arg0: i32) -> (i32, i32) {
    %c0_i32 = arith.constant 0 : i32
    %c0_i32_0 = arith.constant 0 : i32
    %c0_i32_1 = arith.constant 0 : i32
    return %c0_i32, %c0_i32_0 : i32, i32
  }
  func.func @transform_5(%arg0: i32) -> (i32, i32) {
    %c0_i32 = arith.constant 0 : i32
    %c0_i32_0 = arith.constant 0 : i32
    return %arg0, %c0_i32 : i32, i32
  }
}

</mosaic_0001>

<bundles_post_ra>
// kernel: encoder_forward.2
= control target key start
LH: loop header
LB: loop body
LE: loop exit
PB: predicated region body
PF: predicated region fallthrough
CT: control target
= control target key end

     0   :  { %v194_v24 = vmov 0.0   ;;  %s334_s1 = inlined_call_operand.vmem [shape: f32[128,128], index: 1, kind: input, shape index: {}]   ;;  %s335_s0 = inlined_call_operand.vmem [shape: f32[64,128], index: 0, kind: input, shape index: {}]   ;;  %s336_s3 = inlined_call_operand.vmem [shape: f32[1,128], index: 3, kind: output, shape index: {1}]   ;;  %s337_s4 = inlined_call_operand.vmem [shape: f32[1,128], index: 4, kind: output, shape index: {2}]   ;;  %s338_s2 = inlined_call_operand.vmem [shape: f32[64,128], index: 2, kind: output, shape index: {0}]  }
   0x1   :  { %v43_v0 = vld [vmem:[%s334_s1 + $0x78] sm:$0xff]  ;;  %v42_v1 = vld [vmem:[%s334_s1 + $0x70] sm:$0xff]  ;;  %v41_v2 = vld [vmem:[%s334_s1 + $0x68] sm:$0xff]  ;;  %18 = vst [vmem:[%s336_s3] sm:$0x1] %v194_v24 }
   0x2   :  { %44 = vmatpush.msra.mxu0 %v43_v0  ;;  %146 = vmatpush.msra.mxu2 %v43_v0  ;;  %v40_v3 = vld [vmem:[%s334_s1 + $0x60] sm:$0xff]  ;;  %v39_v4 = vld [vmem:[%s334_s1 + $0x58] sm:$0xff]  ;;  %v38_v5 = vld [vmem:[%s334_s1 + $0x50] sm:$0xff]  ;;  %19 = vst [vmem:[%s337_s4] sm:$0x1] %v194_v24 }
   0x3   :  { %145 = vmatpush.msra.mxu1 %v43_v0  ;;  %147 = vmatpush.msra.mxu3 %v43_v0  ;;  %v37_v6 = vld [vmem:[%s334_s1 + $0x48] sm:$0xff]  ;;  %v36_v7 = vld [vmem:[%s334_s1 + $0x40] sm:$0xff]  ;;  %v35_v8 = vld [vmem:[%s334_s1 + $0x38] sm:$0xff] }
   0x4   :  { %45 = vmatpush.msra.mxu0 %v42_v1  ;;  %149 = vmatpush.msra.mxu2 %v42_v1  ;;  %v34_v9 = vld [vmem:[%s334_s1 + $0x30] sm:$0xff]  ;;  %v33_v10 = vld [vmem:[%s334_s1 + $0x28] sm:$0xff]  ;;  %v32_v11 = vld [vmem:[%s334_s1 + $0x20] sm:$0xff] }
   0x5   :  { %148 = vmatpush.msra.mxu1 %v42_v1  ;;  %150 = vmatpush.msra.mxu3 %v42_v1  ;;  %v31_v12 = vld [vmem:[%s334_s1 + $0x18] sm:$0xff]  ;;  %v30_v13 = vld [vmem:[%s334_s1 + $0x10] sm:$0xff]  ;;  %v29_v14 = vld [vmem:[%s334_s1 + $0x8] sm:$0xff] }
   0x6   :  { %46 = vmatpush.msra.mxu0 %v41_v2  ;;  %152 = vmatpush.msra.mxu2 %v41_v2  ;;  %v28_v15 = vld [vmem:[%s334_s1] sm:$0xff]  ;;  %v22_v18 = vld [vmem:[%s335_s0 + $0x10] sm:$0xff]  ;;  %v21_v20 = vld [vmem:[%s335_s0 + $0x8] sm:$0xff] }
   0x7   :  { %151 = vmatpush.msra.mxu1 %v41_v2  ;;  %153 = vmatpush.msra.mxu3 %v41_v2  ;;  %v20_v16 = vld [vmem:[%s335_s0] sm:$0xff]  ;;  %v26_v19 = vld [vmem:[%s335_s0 + $0x30] sm:$0xff]  ;;  %v25_v21 = vld [vmem:[%s335_s0 + $0x28] sm:$0xff] }
   0x8   :  { %47 = vmatpush.msra.mxu0 %v40_v3  ;;  %155 = vmatpush.msra.mxu2 %v40_v3  ;;  %v24_v17 = vld [vmem:[%s335_s0 + $0x20] sm:$0xff]  ;;  %v23_v22 = vld [vmem:[%s335_s0 + $0x18] sm:$0xff] }
   0x9   :  { %154 = vmatpush.msra.mxu1 %v40_v3  ;;  %156 = vmatpush.msra.mxu3 %v40_v3  ;;  %v27_v23 = vld [vmem:[%s335_s0 + $0x38] sm:$0xff]  ;;  %v93_v0 = vld [vmem:[%s336_s3] sm:$0x1] }
   0xa   :  { %48 = vmatpush.msra.mxu0 %v39_v4  ;;  %158 = vmatpush.msra.mxu2 %v39_v4  ;;  %v109_v3 = vld [vmem:[%s337_s4] sm:$0x1] }
   0xb   :  { %157 = vmatpush.msra.mxu1 %v39_v4  ;;  %159 = vmatpush.msra.mxu3 %v39_v4 }
   0xc   :  { %49 = vmatpush.msra.mxu0 %v38_v5  ;;  %161 = vmatpush.msra.mxu2 %v38_v5 }
   0xd   :  { %160 = vmatpush.msra.mxu1 %v38_v5  ;;  %162 = vmatpush.msra.mxu3 %v38_v5 }
   0xe   :  { %50 = vmatpush.msra.mxu0 %v37_v6  ;;  %164 = vmatpush.msra.mxu2 %v37_v6 }
   0xf   :  { %163 = vmatpush.msra.mxu1 %v37_v6  ;;  %165 = vmatpush.msra.mxu3 %v37_v6 }
  0x10   :  { %51 = vmatpush.msra.mxu0 %v36_v7  ;;  %167 = vmatpush.msra.mxu2 %v36_v7 }
  0x11   :  { %166 = vmatpush.msra.mxu1 %v36_v7  ;;  %168 = vmatpush.msra.mxu3 %v36_v7 }
  0x12   :  { %52 = vmatpush.msra.mxu0 %v35_v8  ;;  %170 = vmatpush.msra.mxu2 %v35_v8 }
  0x13   :  { %169 = vmatpush.msra.mxu1 %v35_v8  ;;  %171 = vmatpush.msra.mxu3 %v35_v8 }
  0x14   :  { %53 = vmatpush.msra.mxu0 %v34_v9  ;;  %173 = vmatpush.msra.mxu2 %v34_v9 }
  0x15   :  { %172 = vmatpush.msra.mxu1 %v34_v9  ;;  %174 = vmatpush.msra.mxu3 %v34_v9 }
  0x16   :  { %54 = vmatpush.msra.mxu0 %v33_v10  ;;  %176 = vmatpush.msra.mxu2 %v33_v10 }
  0x17   :  { %175 = vmatpush.msra.mxu1 %v33_v10  ;;  %177 = vmatpush.msra.mxu3 %v33_v10 }
  0x18   :  { %55 = vmatpush.msra.mxu0 %v32_v11  ;;  %179 = vmatpush.msra.mxu2 %v32_v11 }
  0x19   :  { %178 = vmatpush.msra.mxu1 %v32_v11  ;;  %180 = vmatpush.msra.mxu3 %v32_v11 }
  0x1a   :  { %56 = vmatpush.msra.mxu0 %v31_v12  ;;  %182 = vmatpush.msra.mxu2 %v31_v12 }
  0x1b   :  { %181 = vmatpush.msra.mxu1 %v31_v12  ;;  %183 = vmatpush.msra.mxu3 %v31_v12 }
  0x1c   :  { %57 = vmatpush.msra.mxu0 %v30_v13  ;;  %185 = vmatpush.msra.mxu2 %v30_v13 }
  0x1d   :  { %184 = vmatpush.msra.mxu1 %v30_v13  ;;  %186 = vmatpush.msra.mxu3 %v30_v13 }
  0x1e   :  { %58 = vmatpush.msra.mxu0 %v29_v14  ;;  %188 = vmatpush.msra.mxu2 %v29_v14 }
  0x1f   :  { %187 = vmatpush.msra.mxu1 %v29_v14  ;;  %189 = vmatpush.msra.mxu3 %v29_v14 }
  0x20   :  { %59 = vmatpush.msra.mxu0 %v28_v15  ;;  %191 = vmatpush.msra.mxu2 %v28_v15 }
  0x21   :  { %60 = vmatmul.f32.vlgmr.msra.gmra.mxu0 %v20_v16  ;;  %72 = vmatmul.f32.vlgmr.msra.gmra.mxu2 %v24_v17 }
  0x22   :  { %190 = vmatpush.msra.mxu1 %v28_v15  ;;  %192 = vmatpush.msra.mxu3 %v28_v15 }
  0x23   :  { %66 = vmatmul.f32.vlgmr.msra.gmra.mxu1 %v22_v18  ;;  %78 = vmatmul.f32.vlgmr.msra.gmra.mxu3 %v26_v19 }
  0x29   :  { %63 = vmatmul.f32.gmra.mxu0 %v21_v20  ;;  %75 = vmatmul.f32.gmra.mxu2 %v25_v21 }
  0x2b   :  { %69 = vmatmul.f32.gmra.mxu1 %v23_v22  ;;  %81 = vmatmul.f32.gmra.mxu3 %v27_v23 }
  0x9e   :  { %v61_v25 = vpop.f32.mrf.mxu0 }
  0x9f   :  { %85 = vst [vmem:[%s338_s2] sm:$0xff] %v61_v25  ;;  %v110_v30 = vmul.f32 %v61_v25, %v61_v25 }
  0xa0   :  { %v67_v26 = vpop.f32.mrf.mxu1 }
  0xa1   :  { %87 = vst [vmem:[%s338_s2 + $0x10] sm:$0xff] %v67_v26  ;;  %v112_v34 = vmul.f32 %v67_v26, %v67_v26 }
  0xa4   :  { %v73_v27 = vpop.f32.mrf.mxu2 }
  0xa5   :  { %89 = vst [vmem:[%s338_s2 + $0x20] sm:$0xff] %v73_v27  ;;  %v114_v41 = vmul.f32 %v73_v27, %v73_v27 }
  0xa6   :  { %v64_v28 = vpop.f32.mrf.mxu0  ;;  %v79_v29 = vpop.f32.mrf.mxu3 }
  0xa7   :  { %86 = vst [vmem:[%s338_s2 + $0x8] sm:$0xff] %v64_v28  ;;  %v94_v31 = vadd.f32 %v64_v28, %v61_v25  ;;  %v111_v32 = vmul.f32 %v64_v28, %v64_v28  ;;  %v116_v48 = vmul.f32 %v79_v29, %v79_v29 }
  0xa8   :  { %v70_v33 = vpop.f32.mrf.mxu1  ;;  %91 = vst [vmem:[%s338_s2 + $0x30] sm:$0xff] %v79_v29 }
  0xa9   :  { %v118_v35 = vadd.f32 %v111_v32, %v110_v30  ;;  %88 = vst [vmem:[%s338_s2 + $0x18] sm:$0xff] %v70_v33  ;;  %v95_v36 = vadd.f32 %v94_v31, %v67_v26  ;;  %v113_v37 = vmul.f32 %v70_v33, %v70_v33 }
  0xab   :  { %v96_v38 = vadd.f32 %v95_v36, %v70_v33  ;;  %v119_v39 = vadd.f32 %v118_v35, %v112_v34 }
  0xac   :  { %v76_v40 = vpop.f32.mrf.mxu2 }
  0xad   :  { %v120_v42 = vadd.f32 %v119_v39, %v113_v37  ;;  %90 = vst [vmem:[%s338_s2 + $0x28] sm:$0xff] %v76_v40  ;;  %v97_v43 = vadd.f32 %v96_v38, %v73_v27  ;;  %v115_v44 = vmul.f32 %v76_v40, %v76_v40 }
  0xae   :  { %v82_v45 = vpop.f32.mrf.mxu3 }
  0xaf   :  { %v98_v46 = vadd.f32 %v97_v43, %v76_v40  ;;  %v121_v47 = vadd.f32 %v120_v42, %v114_v41  ;;  %92 = vst [vmem:[%s338_s2 + $0x38] sm:$0xff] %v82_v45  ;;  %v117_v51 = vmul.f32 %v82_v45, %v82_v45 }
  0xb1   :  { %v122_v49 = vadd.f32 %v121_v47, %v115_v44  ;;  %v99_v50 = vadd.f32 %v98_v46, %v79_v29 }
  0xb3   :  { %v100_v52 = vadd.f32 %v99_v50, %v82_v45  ;;  %v123_v53 = vadd.f32 %v122_v49, %v116_v48 }
  0xb5   :  { %v101_v54 = vrot.slane %v100_v52, 4  ;;  %v124_v55 = vadd.f32 %v123_v53, %v117_v51 }
  0xb7   :  { %v102_v56 = vadd.f32 %v101_v54, %v100_v52  ;;  %v125_v57 = vrot.slane %v124_v55, 4 }
  0xb9   :  { %v103_v58 = vrot.slane %v102_v56, 2  ;;  %v126_v59 = vadd.f32 %v125_v57, %v124_v55 }
  0xbb   :  { %v104_v60 = vadd.f32 %v103_v58, %v102_v56  ;;  %v127_v61 = vrot.slane %v126_v59, 2 }
  0xbd   :  { %v105_v62 = vrot.slane %v104_v60, 1  ;;  %v128_v63 = vadd.f32 %v127_v61, %v126_v59 }
  0xbf   :  { %v106_v1 = vadd.f32 %v105_v62, %v104_v60  ;;  %v129_v2 = vrot.slane %v128_v63, 1 }
  0xc1   :  { %v107_v4 = vadd.f32 %v106_v1, %v93_v0  ;;  %v130_v5 = vadd.f32 %v129_v2, %v128_v63 }
  0xc3   :  { %108 = vst [vmem:[%s336_s3] sm:$0x1] %v107_v4  ;;  %v131_v6 = vadd.f32 %v130_v5, %v109_v3 }
  0xc5   :  { %132 = vst [vmem:[%s337_s4] sm:$0x1] %v131_v6 }

// kernel: encoder_forward.3
= control target key start
LH: loop header
LB: loop body
LE: loop exit
PB: predicated region body
PF: predicated region fallthrough
CT: control target
= control target key end

     0   :  { %s201_s1 = inlined_call_operand.vmem [shape: f32[1,128], index: 1, kind: input, shape index: {}]   ;;  %s202_s2 = inlined_call_operand.vmem [shape: f32[1,128], index: 2, kind: input, shape index: {}]   ;;  %s203_s3 = inlined_call_operand.vmem [shape: f32[1,128], index: 3, kind: input, shape index: {}]   ;;  %s204_s0 = inlined_call_operand.vmem [shape: f32[64,128], index: 0, kind: input, shape index: {}]   ;;  %s205_s4 = inlined_call_operand.vmem [shape: f32[1,128], index: 4, kind: input, shape index: {}]   ;;  %s206_s5 = inlined_call_operand.vmem [shape: f32[64,128], index: 5, kind: output, shape index: {}]  }
   0x1   :  { %v20_v0 = vld [vmem:[%s201_s1] sm:$0x1]  ;;  %v44_v19 = vld [vmem:[%s204_s0 + $0x8] sm:$0xff]  ;;  %v45_v20 = vld [vmem:[%s204_s0 + $0x10] sm:$0xff] }
   0x2   :  { %v22_v1 = vld [vmem:[%s202_s2] sm:$0x1]  ;;  %v21_v2 = vmul.f32 0.016666668, %v20_v0  ;;  %v46_v21 = vld [vmem:[%s204_s0 + $0x18] sm:$0xff]  ;;  %v48_v25 = vld [vmem:[%s204_s0 + $0x28] sm:$0xff] }
   0x3   :  { %v23_v3 = vmul.f32 0.016666668, %v22_v1  ;;  %v27_v13 = vld [vmem:[%s203_s3] sm:$0x1]  ;;  %v49_v26 = vld [vmem:[%s204_s0 + $0x30] sm:$0xff]  ;;  %v50_v27 = vld [vmem:[%s204_s0 + $0x38] sm:$0xff] }
   0x4   :  { %v24_v4 = vmul.f32 %v21_v2, %v21_v2  ;;  %v40_v17 = vld [vmem:[%s205_s4] sm:$0x1] }
   0x5   :  { %v43_v18 = vld [vmem:[%s204_s0] sm:$0xff] }
   0x6   :  { %v25_v5 = vsub.f32 %v23_v3, %v24_v4  ;;  %v47_v24 = vld [vmem:[%s204_s0 + $0x20] sm:$0xff] }
   0x8   :  { %v26_v6 = vmax.f32 %v25_v5, 0.0 }
   0xa   :  { %v28_v7 = vadd.f32 1e-05, %v26_v6 }
   0xc   :  { %109 = vrsqrt.f32 %v28_v7  ;;  %vm35_vm0 = vweird.f32 %v28_v7 }
  0x12   :  { %v110_v8 = vpop.eup %109 }
  0x13   :  { %v30_v9 = vmul.f32 %v110_v8, %v28_v7  ;;  %vm36_vm1 = vweird.f32 %v110_v8 }
  0x14   :  { %vm37_vm2 = vmor %vm35_vm0, %vm36_vm1 }
  0x15   :  { %v31_v10 = vmul.f32 %v110_v8, %v30_v9 }
  0x17   :  { %v32_v11 = vmul.f32 0.5, %v31_v10 }
  0x19   :  { %v33_v12 = vsub.f32 1.5, %v32_v11 }
  0x1b   :  { %v34_v14 = vmul.f32 %v110_v8, %v33_v12 }
  0x1d   :  { %v38_v15 = vsel %vm37_vm2, %v110_v8, %v34_v14 }
  0x1e   :  { %v39_v16 = vmul.f32 %v38_v15, %v27_v13 }
  0x20   :  { %v41_v22 = vmul.f32 %v39_v16, %v21_v2  ;;  %v52_v23 = vperm.slane %v39_v16, 0 }
  0x22   :  { %v42_v28 = vsub.f32 %v40_v17, %v41_v22  ;;  %v54_v29 = vmul.f32 %v52_v23, %v43_v18  ;;  %v55_v30 = vmul.f32 %v52_v23, %v44_v19  ;;  %v56_v31 = vmul.f32 %v52_v23, %v45_v20 }
  0x23   :  { %v57_v32 = vmul.f32 %v52_v23, %v46_v21  ;;  %v58_v33 = vmul.f32 %v52_v23, %v47_v24  ;;  %v59_v34 = vmul.f32 %v52_v23, %v48_v25  ;;  %v60_v35 = vmul.f32 %v52_v23, %v49_v26 }
  0x24   :  { %v63_v36 = vperm.slane %v42_v28, 0  ;;  %v61_v37 = vmul.f32 %v52_v23, %v50_v27 }
  0x26   :  { %v65_v38 = vadd.f32 %v63_v36, %v54_v29  ;;  %v66_v39 = vadd.f32 %v63_v36, %v55_v30  ;;  %v67_v40 = vadd.f32 %v63_v36, %v56_v31  ;;  %v68_v41 = vadd.f32 %v63_v36, %v57_v32 }
  0x27   :  { %v69_v42 = vadd.f32 %v63_v36, %v58_v33  ;;  %v70_v43 = vadd.f32 %v63_v36, %v59_v34  ;;  %v71_v44 = vadd.f32 %v63_v36, %v60_v35  ;;  %v72_v45 = vadd.f32 %v63_v36, %v61_v37 }
  0x28   :  { %vm73_vm3 = vcmp.ge.f32.partialorder %v65_v38, 0.0  ;;  %v81_v46 = vmul.f32 0.01, %v65_v38  ;;  %vm74_vm4 = vcmp.ge.f32.partialorder %v66_v39, 0.0  ;;  %v82_v47 = vmul.f32 0.01, %v66_v39 }
  0x29   :  { %vm75_vm5 = vcmp.ge.f32.partialorder %v67_v40, 0.0  ;;  %v83_v48 = vmul.f32 0.01, %v67_v40  ;;  %vm76_vm6 = vcmp.ge.f32.partialorder %v68_v41, 0.0  ;;  %v84_v49 = vmul.f32 0.01, %v68_v41 }
  0x2a   :  { %v89_v50 = vsel %vm73_vm3, %v65_v38, %v81_v46  ;;  %v90_v51 = vsel %vm74_vm4, %v66_v39, %v82_v47  ;;  %vm77_vm7 = vcmp.ge.f32.partialorder %v69_v42, 0.0  ;;  %v85_v52 = vmul.f32 0.01, %v69_v42 }
  0x2b   :  { %97 = vst [vmem:[%s206_s5] sm:$0xff] %v89_v50  ;;  %v91_v53 = vsel %vm75_vm5, %v67_v40, %v83_v48  ;;  %v92_v54 = vsel %vm76_vm6, %v68_v41, %v84_v49  ;;  %vm78_vm8 = vcmp.ge.f32.partialorder %v70_v43, 0.0  ;;  %v86_v55 = vmul.f32 0.01, %v70_v43 }
  0x2c   :  { %98 = vst [vmem:[%s206_s5 + $0x8] sm:$0xff] %v90_v51  ;;  %v93_v56 = vsel %vm77_vm7, %v69_v42, %v85_v52  ;;  %vm79_vm9 = vcmp.ge.f32.partialorder %v71_v44, 0.0  ;;  %v87_v57 = vmul.f32 0.01, %v71_v44  ;;  %vm80_vm10 = vcmp.ge.f32.partialorder %v72_v45, 0.0 }
  0x2d   :  { %99 = vst [vmem:[%s206_s5 + $0x10] sm:$0xff] %v91_v53  ;;  %v94_v58 = vsel %vm78_vm8, %v70_v43, %v86_v55  ;;  %v88_v59 = vmul.f32 0.01, %v72_v45 }
  0x2e   :  { %100 = vst [vmem:[%s206_s5 + $0x18] sm:$0xff] %v92_v54  ;;  %v95_v60 = vsel %vm79_vm9, %v71_v44, %v87_v57 }
  0x2f   :  { %101 = vst [vmem:[%s206_s5 + $0x20] sm:$0xff] %v93_v56  ;;  %v96_v61 = vsel %vm80_vm10, %v72_v45, %v88_v59 }
  0x30   :  { %102 = vst [vmem:[%s206_s5 + $0x28] sm:$0xff] %v94_v58 }
  0x31   :  { %103 = vst [vmem:[%s206_s5 + $0x30] sm:$0xff] %v95_v60 }
  0x32   :  { %104 = vst [vmem:[%s206_s5 + $0x38] sm:$0xff] %v96_v61 }

</bundles_post_ra>
